<compile_context>
chip_gen: v5e
topology: v5e:2x2
jax: 0.10.0
libtpu: 0.0.40
codegen_flags: <defaults>
</compile_context>

<pallas_src>
import functools

import jax
import jax.numpy as jnp
from jax import lax
from jax.experimental import pallas as pl
from jax.experimental.pallas import tpu as pltpu


# ---------------------------------------------------------------------------
# Tiling helpers
# ---------------------------------------------------------------------------
def _pick_tile(dim, target, align):
    """Largest divisor of `dim` that is a multiple of `align` and <= target;
    falls back to the full dim (always a legal BlockSpec shape)."""
    if dim <= target or dim <= align:
        return dim
    t = (min(target, dim) // align) * align
    while t >= align:
        if dim % t == 0:
            return t
        t -= align
    return dim


def _prefer_two_steps(dim, tile, align):
    """Shrink a full-dim tile so a 'parallel' grid axis gets >= 2 steps (lets
    v7x shard across both TensorCores); no-op when the dim is too small."""
    if tile == dim and dim >= 2 * align:
        half = _pick_tile(dim, dim // 2, align)
        if half < dim:
            return half
    return tile


def _vmem_budgets():
    """Per-generation VMEM planning: (tile budget, scoped vmem limit)."""
    try:
        cap = int(pltpu.get_tpu_info().vmem_capacity_bytes)
    except Exception:
        cap = 64 * 1024 * 1024          # conservative fallback (v7x per-TC VMEM)
    tile_budget = int(cap * 0.40)       # budget that tile selection targets
    vmem_limit = int(cap * 0.60)        # scoped limit handed to Mosaic (headroom)
    return tile_budget, vmem_limit


# ---------------------------------------------------------------------------
# Kernel 1: LayerNorm statistics only -> per-row mean and 1/(std + eps)
# (torch semantics: unbiased std, eps added to the std)
# ---------------------------------------------------------------------------
def _ln_stats_kernel(x_ref, mean_ref, inv_ref, *, eps):
    x = x_ref[...].astype(jnp.float32)                     # (tm, D)
    d = x.shape[-1]
    mean = jnp.mean(x, axis=-1, keepdims=True)
    xc = x - mean
    var = jnp.sum(xc * xc, axis=-1, keepdims=True) * (1.0 / (d - 1))
    mean_ref[...] = mean
    inv_ref[...] = 1.0 / (jnp.sqrt(var) + eps)             # exact (1e-4 check)


def _ln_stats(x2d, *, eps, tile_budget, vmem_limit, tm_target=1024):
    M, D = x2d.shape
    xb = x2d.dtype.itemsize
    tm = _pick_tile(M, tm_target, 8)

    def usage(t):
        # double-buffered x tile + two tiny lane-padded output buffers
        return 2 * t * D * xb + 4 * t * 128 * 4

    while usage(tm) > tile_budget and tm > 8:
        smaller = _pick_tile(M, max(8, tm // 2), 8)
        if smaller >= tm:
            break
        tm = smaller
    tm = _prefer_two_steps(M, tm, 8)

    kernel = functools.partial(_ln_stats_kernel, eps=eps)
    return pl.pallas_call(
        kernel,
        out_shape=(jax.ShapeDtypeStruct((M, 1), jnp.float32),
                   jax.ShapeDtypeStruct((M, 1), jnp.float32)),
        grid_spec=pltpu.PrefetchScalarGridSpec(
            num_scalar_prefetch=0,
            grid=(M // tm,),
            in_specs=[pl.BlockSpec((tm, D), lambda i: (i, 0))],
            out_specs=[pl.BlockSpec((tm, 1), lambda i: (i, 0)),
                       pl.BlockSpec((tm, 1), lambda i: (i, 0))],
        ),
        compiler_params=pltpu.CompilerParams(
            dimension_semantics=("parallel",),
            vmem_limit_bytes=vmem_limit),
    )(x2d)


# ---------------------------------------------------------------------------
# Kernel 2: fused  out = x + (LayerNormApply(x) @ W + bias)
#   grid = (M/tm, N/tn, K/tk). Output block is k-invariant -> VMEM-resident
#   accumulator. Bias + residual are loaded once and used to init at k == 0.
# ---------------------------------------------------------------------------
def _fused_ln_linear_residual_kernel(x_ref, mean_ref, inv_ref, g_ref, bt_ref,
                                     w_ref, b_ref, r_ref, o_ref, *, mxu_dtype):
    k = pl.program_id(2)

    # LayerNorm application on the raw x tile (stats precomputed), all in f32.
    x = x_ref[...].astype(jnp.float32)                     # (tm, tk)
    xn = (x - mean_ref[...]) * inv_ref[...] * g_ref[...] + bt_ref[...]

    w = w_ref[...]
    if mxu_dtype is not None:                              # bf16 MXU operands
        xn = xn.astype(mxu_dtype)
        w = w.astype(mxu_dtype)
        precision = None
    else:
        precision = lax.Precision.HIGHEST                  # true-f32 matmul

    # Init the resident output block with bias + residual on the first K step.
    @pl.when(k == 0)
    def _():
        o_ref[...] = b_ref[...] + r_ref[...]

    # Accumulate directly into the f32 output block (no separate acc scratch).
    o_ref[...] += jnp.dot(xn, w, preferred_element_type=jnp.float32,
                          precision=precision)


def _fused_ln_linear_residual(x2d, mean, inv, gamma_row, beta_row, w, bias_row,
                              *, mxu_dtype, tile_budget, vmem_limit,
                              tm_target=512, tn_target=512, tk_target=512):
    M, K = x2d.shape
    K2, N = w.shape
    assert K == K2 and N == K, "residual fusion requires a square (D -> D) sublayer"
    assert x2d.dtype == jnp.float32, "accumulates directly into the f32 output block"

    xb = x2d.dtype.itemsize
    wb = w.dtype.itemsize
    tm = _pick_tile(M, tm_target, 8)
    tn = _pick_tile(N, tn_target, 128)
    tk = _pick_tile(K, tk_target, 128)

    def usage(tm_, tn_, tk_):
        return (2 * tm_ * tk_ * xb          # raw x tiles (double-buffered)
                + 2 * tk_ * tn_ * wb        # weight tiles
                + 2 * tm_ * tn_ * xb        # residual tiles
                + 2 * tm_ * tn_ * 4         # resident output / writeback buffer
                + 4 * tm_ * 128 * 4         # mean / inv (lane-padded)
                + 4 * 8 * tk_ * 4           # gamma / beta rows (sublane-padded)
                + 2 * 8 * tn_ * 4)          # bias row

    for _ in range(64):
        if usage(tm, tn, tk) <= tile_budget:
            break
        if tk > 128:
            cand = min(tk, _pick_tile(K, max(128, tk // 2), 128))
            if cand < tk:
                tk = cand
                continue
        if tn > 128:
            cand = min(tn, _pick_tile(N, max(128, tn // 2), 128))
            if cand < tn:
                tn = cand
                continue
        if tm > 8:
            cand = min(tm, _pick_tile(M, max(8, tm // 2), 8))
            if cand < tm:
                tm = cand
                continue
        break

    # Keep >= 2 steps on the parallel axes when shapes allow (v7x megacore).
    tm = _prefer_two_steps(M, tm, 8)
    tn = _prefer_two_steps(N, tn, 128)

    kernel = functools.partial(_fused_ln_linear_residual_kernel,
                               mxu_dtype=mxu_dtype)
    return pl.pallas_call(
        kernel,
        out_shape=jax.ShapeDtypeStruct((M, N), x2d.dtype),
        grid_spec=pltpu.PrefetchScalarGridSpec(
            num_scalar_prefetch=0,
            grid=(M // tm, N // tn, K // tk),
            in_specs=[
                pl.BlockSpec((tm, tk), lambda i, j, k: (i, k)),   # raw x
                pl.BlockSpec((tm, 1), lambda i, j, k: (i, 0)),    # mean
                pl.BlockSpec((tm, 1), lambda i, j, k: (i, 0)),    # 1/(std+eps)
                pl.BlockSpec((1, tk), lambda i, j, k: (0, k)),    # gamma
                pl.BlockSpec((1, tk), lambda i, j, k: (0, k)),    # beta
                pl.BlockSpec((tk, tn), lambda i, j, k: (k, j)),   # W
                pl.BlockSpec((1, tn), lambda i, j, k: (0, j)),    # bias
                pl.BlockSpec((tm, tn), lambda i, j, k: (i, j)),   # residual x
            ],
            out_specs=pl.BlockSpec((tm, tn), lambda i, j, k: (i, j)),
        ),
        compiler_params=pltpu.CompilerParams(
            dimension_semantics=("parallel", "parallel", "arbitrary"),
            vmem_limit_bytes=vmem_limit),
    )(x2d, mean, inv, gamma_row, beta_row, w, bias_row, x2d)


# ---------------------------------------------------------------------------
# SublayerConnection forward (dense D -> D sublayer, fully fused)
# ---------------------------------------------------------------------------
def sublayer_connection_dense(x, gamma, beta, w, b, *, eps=1e-6, mxu_dtype=None):
    """out = x + dropout(Linear(LayerNorm(x))) with everything but the tiny
    per-row LN stats fused into a single matmul kernel."""
    B, S, D = x.shape
    Kw, N = w.shape
    assert Kw == D and N == D
    M = B * S
    x2 = x.reshape(M, D)                      # metadata-only reshape in XLA

    tile_budget, vmem_limit = _vmem_budgets()
    mean, inv = _ln_stats(x2, eps=eps, tile_budget=tile_budget,
                          vmem_limit=vmem_limit)

    # Store weights in the MXU operand dtype so the weight DMA bytes halve.
    w_op = w.astype(mxu_dtype) if mxu_dtype is not None else w

    # TODO(synk): nn.Dropout(p) omitted (eval-mode identity); training-mode dropout
    # would fuse into this same epilogue via pltpu.prng_seed / prng_random_bits.
    out = _fused_ln_linear_residual(
        x2, mean, inv, gamma.reshape(1, D), beta.reshape(1, D), w_op,
        b.reshape(1, D), mxu_dtype=mxu_dtype,
        tile_budget=tile_budget, vmem_limit=vmem_limit)
    return out.reshape(B, S, D)


# ---------------------------------------------------------------------------
# Pure-JAX reference (torch semantics: unbiased std, eps added to std)
# ---------------------------------------------------------------------------
def reference(x, gamma, beta, w, b, eps=1e-6):
    mean = x.mean(-1, keepdims=True)
    std = jnp.std(x, axis=-1, ddof=1, keepdims=True)
    normed = gamma * (x - mean) / (std + eps) + beta
    y = jnp.dot(normed, w, precision=lax.Precision.HIGHEST)
    return x + (y + b)


# ---------------------------------------------------------------------------
# Demo
# ---------------------------------------------------------------------------
if __name__ == "__main__":
    B, S, D = 2, 8, 128                       # lane-dense feature dim

    root = jax.random.PRNGKey(0)
    kx, kg, kb, kw, kbb = jax.random.split(root, 5)

    x = jax.random.normal(kx, (B, S, D), jnp.float32)
    gamma = 1.0 + 0.1 * jax.random.normal(kg, (D,), jnp.float32)
    beta = 0.1 * jax.random.normal(kb, (D,), jnp.float32)
    bound = 1.0 / (D ** 0.5)
    w = jax.random.uniform(kw, (D, D), jnp.float32, -bound, bound)
    b = jax.random.uniform(kbb, (D,), jnp.float32, -bound, bound)

    @jax.jit
    def forward_f32(x, gamma, beta, w, b):
        return sublayer_connection_dense(x, gamma, beta, w, b,
                                         eps=1e-6, mxu_dtype=None)

    @jax.jit
    def forward_bf16(x, gamma, beta, w, b):
        return sublayer_connection_dense(x, gamma, beta, w, b,
                                         eps=1e-6, mxu_dtype=jnp.bfloat16)

    ref = reference(x, gamma, beta, w, b)

    out = jax.block_until_ready(forward_f32(x, gamma, beta, w, b))
    assert out.shape == (B, S, D)
    err = float(jnp.max(jnp.abs(out - ref)))
    assert jnp.allclose(out, ref, atol=1e-4, rtol=1e-4), f"f32 max err {err}"

    out_bf16 = jax.block_until_ready(forward_bf16(x, gamma, beta, w, b))
    err_bf16 = float(jnp.max(jnp.abs(out_bf16 - ref)))
    assert jnp.allclose(out_bf16, ref, atol=5e-2, rtol=5e-2), \
        f"bf16 max err {err_bf16}"

    print("KERNEL_OK")
</pallas_src>

<mosaic_0001>
module attributes {stable_mosaic.version = 11 : i64} {
  func.func @_ln_stats_kernel(%arg0: i32, %arg1: memref<8x128xf32, #tpu.memory_space<vmem>>, %arg2: memref<8x1xf32, #tpu.memory_space<vmem>>, %arg3: memref<8x1xf32, #tpu.memory_space<vmem>>) attributes {dimension_semantics = [#tpu.dimension_semantics<parallel>], iteration_bounds = array<i64: 2>, scalar_prefetch = 0 : i64, scratch_operands = 0 : i64, tpu.core_type = #tpu.core_type<tc>, window_params = [{transform_indices = @transform_0, window_bounds = array<i64: 8, 128>}, {transform_indices = @transform_1, window_bounds = array<i64: 8, 1>}, {transform_indices = @transform_2, window_bounds = array<i64: 8, 1>}]} {
    %c0 = arith.constant 0 : index
    %c0_0 = arith.constant 0 : index
    %0 = vector.load %arg1[%c0, %c0_0] : memref<8x128xf32, #tpu.memory_space<vmem>>, vector<8x128xf32>
    %cst = arith.constant dense<0.000000e+00> : vector<8xf32>
    %1 = vector.multi_reduction <add>, %0, %cst [1] : vector<8x128xf32> to vector<8xf32>
    %2 = vector.shape_cast %1 : vector<8xf32> to vector<8x1xf32>
    %cst_1 = arith.constant 1.280000e+02 : f32
    %3 = vector.broadcast %cst_1 : f32 to vector<8x1xf32>
    %4 = arith.divf %2, %3 : vector<8x1xf32>
    %5 = vector.broadcast %4 : vector<8x1xf32> to vector<8x128xf32>
    %6 = arith.subf %0, %5 : vector<8x128xf32>
    %7 = arith.mulf %6, %6 : vector<8x128xf32>
    %cst_2 = arith.constant dense<0.000000e+00> : vector<8xf32>
    %8 = vector.multi_reduction <add>, %7, %cst_2 [1] : vector<8x128xf32> to vector<8xf32>
    %9 = vector.shape_cast %8 : vector<8xf32> to vector<8x1xf32>
    %cst_3 = arith.constant 0.00787401571 : f32
    %10 = vector.broadcast %cst_3 : f32 to vector<8x1xf32>
    %11 = arith.mulf %9, %10 : vector<8x1xf32>
    %c0_4 = arith.constant 0 : index
    %c0_5 = arith.constant 0 : index
    %12 = vector.load %arg2[%c0_4, %c0_5] : memref<8x1xf32, #tpu.memory_space<vmem>>, vector<8x1xf32>
    tpu.vector_store %arg2[%c0_4, %c0_5], %4 {strides = array<i32>} : memref<8x1xf32, #tpu.memory_space<vmem>>, vector<8x1xf32>,
    %13 = math.sqrt %11 : vector<8x1xf32>
    %cst_6 = arith.constant 9.99999997E-7 : f32
    %14 = vector.broadcast %cst_6 : f32 to vector<8x1xf32>
    %15 = arith.addf %13, %14 : vector<8x1xf32>
    %cst_7 = arith.constant 1.000000e+00 : f32
    %16 = vector.broadcast %cst_7 : f32 to vector<8x1xf32>
    %17 = arith.divf %16, %15 : vector<8x1xf32>
    %c0_8 = arith.constant 0 : index
    %c0_9 = arith.constant 0 : index
    %18 = vector.load %arg3[%c0_8, %c0_9] : memref<8x1xf32, #tpu.memory_space<vmem>>, vector<8x1xf32>
    tpu.vector_store %arg3[%c0_8, %c0_9], %17 {strides = array<i32>} : memref<8x1xf32, #tpu.memory_space<vmem>>, vector<8x1xf32>,
    return
  }
  func.func @transform_0(%arg0: i32) -> (i32, i32) {
    %c0_i32 = arith.constant 0 : i32
    %c0_i32_0 = arith.constant 0 : i32
    return %arg0, %c0_i32 : i32, i32
  }
  func.func @transform_1(%arg0: i32) -> (i32, i32) {
    %c0_i32 = arith.constant 0 : i32
    %c0_i32_0 = arith.constant 0 : i32
    return %arg0, %c0_i32 : i32, i32
  }
  func.func @transform_2(%arg0: i32) -> (i32, i32) {
    %c0_i32 = arith.constant 0 : i32
    %c0_i32_0 = arith.constant 0 : i32
    return %arg0, %c0_i32 : i32, i32
  }
}

module attributes {stable_mosaic.version = 11 : i64} {
  func.func @_fused_ln_linear_residual_kernel(%arg0: i32, %arg1: i32, %arg2: i32, %arg3: memref<8x128xf32, #tpu.memory_space<vmem>>, %arg4: memref<8x1xf32, #tpu.memory_space<vmem>>, %arg5: memref<8x1xf32, #tpu.memory_space<vmem>>, %arg6: memref<1x128xf32, #tpu.memory_space<vmem>>, %arg7: memref<1x128xf32, #tpu.memory_space<vmem>>, %arg8: memref<128x128xf32, #tpu.memory_space<vmem>>, %arg9: memref<1x128xf32, #tpu.memory_space<vmem>>, %arg10: memref<8x128xf32, #tpu.memory_space<vmem>>, %arg11: memref<8x128xf32, #tpu.memory_space<vmem>>) attributes {dimension_semantics = [#tpu.dimension_semantics<parallel>, #tpu.dimension_semantics<parallel>, #tpu.dimension_semantics<arbitrary>], iteration_bounds = array<i64: 2, 1, 1>, scalar_prefetch = 0 : i64, scratch_operands = 0 : i64, tpu.core_type = #tpu.core_type<tc>, window_params = [{transform_indices = @transform_0, window_bounds = array<i64: 8, 128>}, {transform_indices = @transform_1, window_bounds = array<i64: 8, 1>}, {transform_indices = @transform_2, window_bounds = array<i64: 8, 1>}, {transform_indices = @transform_3, window_bounds = array<i64: 1, 128>}, {transform_indices = @transform_4, window_bounds = array<i64: 1, 128>}, {transform_indices = @transform_5, window_bounds = array<i64: 128, 128>}, {transform_indices = @transform_6, window_bounds = array<i64: 1, 128>}, {transform_indices = @transform_7, window_bounds = array<i64: 8, 128>}, {transform_indices = @transform_8, window_bounds = array<i64: 8, 128>}]} {
    %c0 = arith.constant 0 : index
    %c0_0 = arith.constant 0 : index
    %0 = vector.load %arg3[%c0, %c0_0] : memref<8x128xf32, #tpu.memory_space<vmem>>, vector<8x128xf32>
    %c0_1 = arith.constant 0 : index
    %c0_2 = arith.constant 0 : index
    %1 = vector.load %arg4[%c0_1, %c0_2] : memref<8x1xf32, #tpu.memory_space<vmem>>, vector<8x1xf32>
    %2 = vector.broadcast %1 : vector<8x1xf32> to vector<8x128xf32>
    %3 = arith.subf %0, %2 : vector<8x128xf32>
    %c0_3 = arith.constant 0 : index
    %c0_4 = arith.constant 0 : index
    %4 = vector.load %arg5[%c0_3, %c0_4] : memref<8x1xf32, #tpu.memory_space<vmem>>, vector<8x1xf32>
    %5 = vector.broadcast %4 : vector<8x1xf32> to vector<8x128xf32>
    %6 = arith.mulf %3, %5 : vector<8x128xf32>
    %c0_5 = arith.constant 0 : index
    %c0_6 = arith.constant 0 : index
    %7 = vector.load %arg6[%c0_5, %c0_6] : memref<1x128xf32, #tpu.memory_space<vmem>>, vector<1x128xf32>
    %8 = vector.broadcast %7 : vector<1x128xf32> to vector<8x128xf32>
    %9 = arith.mulf %6, %8 : vector<8x128xf32>
    %c0_7 = arith.constant 0 : index
    %c0_8 = arith.constant 0 : index
    %10 = vector.load %arg7[%c0_7, %c0_8] : memref<1x128xf32, #tpu.memory_space<vmem>>, vector<1x128xf32>
    %11 = vector.broadcast %10 : vector<1x128xf32> to vector<8x128xf32>
    %12 = arith.addf %9, %11 : vector<8x128xf32>
    %c0_9 = arith.constant 0 : index
    %c0_10 = arith.constant 0 : index
    %13 = vector.load %arg8[%c0_9, %c0_10] : memref<128x128xf32, #tpu.memory_space<vmem>>, vector<128x128xf32>
    %c0_i32 = arith.constant 0 : i32
    %14 = arith.cmpi eq, %arg2, %c0_i32 : i32
    %15 = arith.extui %14 : i1 to i32
    %c0_i32_11 = arith.constant 0 : i32
    %16 = arith.cmpi ne, %15, %c0_i32_11 : i32
    scf.if %16 {
      %c0_16 = arith.constant 0 : index
      %c0_17 = arith.constant 0 : index
      %21 = vector.load %arg9[%c0_16, %c0_17] : memref<1x128xf32, #tpu.memory_space<vmem>>, vector<1x128xf32>
      %c0_18 = arith.constant 0 : index
      %c0_19 = arith.constant 0 : index
      %22 = vector.load %arg10[%c0_18, %c0_19] : memref<8x128xf32, #tpu.memory_space<vmem>>, vector<8x128xf32>
      %23 = vector.broadcast %21 : vector<1x128xf32> to vector<8x128xf32>
      %24 = arith.addf %23, %22 : vector<8x128xf32>
      %c0_20 = arith.constant 0 : index
      %c0_21 = arith.constant 0 : index
      %25 = vector.load %arg11[%c0_20, %c0_21] : memref<8x128xf32, #tpu.memory_space<vmem>>, vector<8x128xf32>
      tpu.vector_store %arg11[%c0_20, %c0_21], %24 {strides = array<i32>} : memref<8x128xf32, #tpu.memory_space<vmem>>, vector<8x128xf32>,
    } else {
    }
    %c0_12 = arith.constant 0 : index
    %c0_13 = arith.constant 0 : index
    %17 = vector.load %arg11[%c0_12, %c0_13] : memref<8x128xf32, #tpu.memory_space<vmem>>, vector<8x128xf32>
    %cst = arith.constant dense<0.000000e+00> : vector<8x128xf32>
    %18 = tpu.matmul %12, %13, %cst {dimension_numbers = #tpu.dot_dimension_numbers<[1], [0], [0], [1], [0, 0, 1, 1], [], []>, precision = #tpu.contract_precision<fp32>} : vector<8x128xf32>, vector<128x128xf32>, vector<8x128xf32> -> vector<8x128xf32>
    %19 = arith.addf %17, %18 : vector<8x128xf32>
    %c0_14 = arith.constant 0 : index
    %c0_15 = arith.constant 0 : index
    %20 = vector.load %arg11[%c0_14, %c0_15] : memref<8x128xf32, #tpu.memory_space<vmem>>, vector<8x128xf32>
    tpu.vector_store %arg11[%c0_14, %c0_15], %19 {strides = array<i32>} : memref<8x128xf32, #tpu.memory_space<vmem>>, vector<8x128xf32>,
    return
  }
  func.func @transform_0(%arg0: i32, %arg1: i32, %arg2: i32) -> (i32, i32) {
    %c0_i32 = arith.constant 0 : i32
    return %arg0, %arg2 : i32, i32
  }
  func.func @transform_1(%arg0: i32, %arg1: i32, %arg2: i32) -> (i32, i32) {
    %c0_i32 = arith.constant 0 : i32
    %c0_i32_0 = arith.constant 0 : i32
    return %arg0, %c0_i32 : i32, i32
  }
  func.func @transform_2(%arg0: i32, %arg1: i32, %arg2: i32) -> (i32, i32) {
    %c0_i32 = arith.constant 0 : i32
    %c0_i32_0 = arith.constant 0 : i32
    return %arg0, %c0_i32 : i32, i32
  }
  func.func @transform_3(%arg0: i32, %arg1: i32, %arg2: i32) -> (i32, i32) {
    %c0_i32 = arith.constant 0 : i32
    %c0_i32_0 = arith.constant 0 : i32
    return %c0_i32, %arg2 : i32, i32
  }
  func.func @transform_4(%arg0: i32, %arg1: i32, %arg2: i32) -> (i32, i32) {
    %c0_i32 = arith.constant 0 : i32
    %c0_i32_0 = arith.constant 0 : i32
    return %c0_i32, %arg2 : i32, i32
  }
  func.func @transform_5(%arg0: i32, %arg1: i32, %arg2: i32) -> (i32, i32) {
    %c0_i32 = arith.constant 0 : i32
    return %arg2, %arg1 : i32, i32
  }
  func.func @transform_6(%arg0: i32, %arg1: i32, %arg2: i32) -> (i32, i32) {
    %c0_i32 = arith.constant 0 : i32
    %c0_i32_0 = arith.constant 0 : i32
    return %c0_i32, %arg1 : i32, i32
  }
  func.func @transform_7(%arg0: i32, %arg1: i32, %arg2: i32) -> (i32, i32) {
    %c0_i32 = arith.constant 0 : i32
    return %arg0, %arg1 : i32, i32
  }
  func.func @transform_8(%arg0: i32, %arg1: i32, %arg2: i32) -> (i32, i32) {
    %c0_i32 = arith.constant 0 : i32
    return %arg0, %arg1 : i32, i32
  }
}

</mosaic_0001>

<bundles_post_ra>
// kernel: forward_f32.2
= control target key start
LH: loop header
LB: loop body
LE: loop exit
PB: predicated region body
PF: predicated region fallthrough
CT: control target
= control target key end

     0   :  { %8 = vsyncpa [#allocation3], 0  ;;  %s560_s0 = inlined_call_operand.hbm [shape: f32[16,128], index: 0, kind: input, shape index: {}]   ;;  %s561_s1 = inlined_call_operand.vmem [shape: f32[16,1], index: 1, kind: output, shape index: {0}]   ;;  %s562_s2 = inlined_call_operand.vmem [shape: f32[16,1], index: 2, kind: output, shape index: {1}]  }
   0x1   :  { %10 = vsyncpa [#allocation3 + $0x1], 0  ;;  %s454_s9 = smov 0   ;;  %s456_s10 = smov 0  }
   0x2   :  { %s458_s11 = smov 0   ;;  %s460_s12 = smov 0  }
   0x3 LB: > { %s473_s13 = sadd.s32 4294967295, %s436_s12   ;;  %s476_s14 = sadd.s32 1, %s436_s12   ;;  %s436_s12 = sphi %s460_s12, %s569_s12   ;;  %s432_s11 = sphi %s458_s11, %s568_s11   ;;  %s428_s10 = sphi %s456_s10, %s567_s10   ;;  %s424_s9 = sphi %s454_s9, %s566_s9  }
   0x4   : > { %s20_s15 = ssub.s32 %s436_s12, %s476_s14  ;;  %s23_s16 = sadd.s32 1, %s432_s11 }
   0x5   : > { %p21_p0 = scmp.eq.s32.totalorder %s20_s15, 0  ;;  %p30_p1 = scmp.ne.s32.totalorder %s432_s11, %s428_s10 }
   0x6   : > { %p31_p2 = scmp.eq.s32.totalorder %s436_s12, 0  ;;  %p36_p3 = scmp.ne.s32.totalorder %s428_s10, %s424_s9 }
   0x7   : > { %s486_s17 = scalar_select %p21_p0, %s432_s11, %s23_s16  }
   0x8   : > { %p488_p4 = por %p31_p2, %p30_p1  ;;  %p37_p5 = scmp.eq.s32.totalorder %s473_s13, 0 }
   0x9   : > { %p332_p6 = scmp.lt.s32.totalorder %s436_s12, 2  ;;  %s112_s20 = sand.u32 1, %s432_s11  }
   0xa   : > { %p494_p7 = por %p37_p5, %p36_p3  ;;  %s318_s21 = sshll.u32 %s112_s20, 3 }
   0xb   : > { %s319_s22 = sshll.u32 %s436_s12, 3  ;;  %s116_s26 = scalar_lea.vmem [#allocation2], %s318_s21 }
   0xc   : > { %s120_s25 = scalar_lea.hbm %s560_s0, %s319_s22  ;;  %s124_s27 = sshll.u32 %s116_s26, 4  ;;  %s125_s27 = int_to_ptr.vmem [resolvable:$true] %s124_s27 }
   0xd   : > { %s122_s28 = sshll.u32 %s120_s25, 4  ;;  %p505_p8 = pnand %p332_p6, %p488_p4  ;;  %s123_s28 = int_to_ptr.hbm [resolvable:$true] %s122_s28 }
   0xe   : > { %p320_p9 = scmp.ge.s32.totalorder %s436_s12, 1  ;;  %p129_p10 = scmp.lt.s32.totalorder %s436_s12, 3 }
   0xf   : > { %s113_s30 = scalar_lea.sflag [#allocation3], %s112_s20  ;;  %s372_s3 = sshra.s32 %s123_s28, 4  ;;  %s373_s3 = int_to_ptr.hbm [resolvable:$true] %s372_s3 }
  0x10   : > { %s374_s4 = scalar_lea.hbm %s373_s3, 8  ;;  %p376_p12 = pneg %p505_p8 }
  0x11   : > { %p375_p11 = scmp.ne.s32.totalorder %s373_s3, %s374_s4  ;;  %s379_s7 = scalar_lea.hbm %s560_s0, 16 }
  0x12   : > { %p380_p1 = scmp.lt.s32.totalorder %s373_s3, %s560_s0  ;;  %p381_p2 = scmp.lt.s32.totalorder %s379_s7, %s374_s4 }
  0x13   : > { %p377_p13 = pnand %p376_p12, %p375_p11 }
  0x14   : > { %p382_p3 = por %p381_p2, %p380_p1 }
  0x15   : > { %p378_p0 = pneg %p377_p13 }
  0x17   : > { %p383_p4 = pnand %p382_p3, %p378_p0 }
  0x19   : > { %386 = shalt.err (!%p383_p4)
}
  0x1a   : > { %331 = dma.hbm_to_vmem [thread:$0]  (!%p505_p8), %s123_s28, 128, %s125_s27, %s113_s30  }
  0x1b   : > { %p130_p5 = pnand %p320_p9, %p129_p10 }
  0x1c   : > { %s135_s15 = sand.u32 (!%p130_p5), 1, %s428_s10  }
  0x1d   : > { %133 = sbr.rel (%p130_p5) target bundleno = 317 (0x13d), region = 24  ;;  %s321_s16 = sshll.u32 (!%p130_p5), %s135_s15, 3 }
  0x1e   : > { %s136_s18 = scalar_lea.sflag (!%p130_p5), [#allocation3], %s135_s15  ;;  %s139_s20 = scalar_lea.vmem (!%p130_p5), [#allocation2], %s321_s16 }
  0x22   : > { %419 = dma.done.wait (%p494_p7), %s136_s18, 128  }
  0x23   : > { %421 = vsyncadd (%p494_p7), %s136_s18, 4294967168  ;;  %v172_v0 = vld [vmem:[%s139_s20] sm:$0xff]  ;;  %v438_v1 = vmov 128.0   ;;  %p164_p6 = scmp.lt.s32.totalorder %s473_s13, 1  ;;  %vm188_vm1 = vcmask 7168  }
  0x24   : > { %173 = vadd.xlane.f32.xlu0 %v172_v0  ;;  %366 = vrcp.f32 %v438_v1 }
  0x25   : > { %s571_s13 = smov (!%p164_p6, %s473_s13), 1 }
  0x26   : > { %s322_s12 = sshll.u32 %s571_s13, 3 }
  0x27   : > { %s167_s22 = scalar_lea.vmem %s561_s1, %s322_s12  ;;  %s171_s25 = scalar_lea.vmem %s562_s2, %s322_s12 }
  0x2a   : > { %v367_v2 = vpop.eup %366 }
  0x2b   : > { %v176_v3 = vmul.f32 128.0, %v367_v2  ;;  %vm180_vm0 = vweird.f32 %v367_v2 }
  0x2d   : > { %v177_v4 = vsub.f32 1.0, %v176_v3 }
  0x2f   : > { %v178_v5 = vmul.f32 %v367_v2, %v177_v4 }
  0x31   : > { %v179_v6 = vadd.f32 %v367_v2, %v178_v5 }
  0x33   : > { %v181_v7 = vsel %vm180_vm0, %v367_v2, %v179_v6 }
  0x97   : > { %v174_v8 = vpop.xlane.xlu0 %173 }
  0x98   : > { %v182_v9 = vmul.f32 %v181_v7, %v174_v8 }
  0x9a   : > { %189 = vst.msk [vmem:[%s167_s22] sm:$0xff] %vm188_vm1, %v182_v9  ;;  %v183_v10 = vsub.f32 %v172_v0, %v182_v9 }
  0x9c   : > { %v184_v11 = vmul.f32 %v183_v10, %v183_v10 }
  0x9e   : > { %185 = vadd.xlane.f32.xlu0 %v184_v11 }
 0x111   : > { %v186_v12 = vpop.xlane.xlu0 %185 }
 0x112   : > { %v187_v13 = vmul.f32 0.007874016, %v186_v12 }
 0x114   : > { %368 = vrsqrt.f32 %v187_v13  ;;  %vm197_vm2 = vcmp.eq.f32.partialorder %v187_v13, inf  ;;  %v200_v21 = vand.u32 2147483648, %v187_v13  ;;  %vm199_vm3 = vcmp.eq.f32.partialorder %v187_v13, 0.0 }
 0x11a   : > { %v369_v14 = vpop.eup %368 }
 0x11b   : > { %v191_v15 = vmul.f32 %v369_v14, %v187_v13 }
 0x11d   : > { %v192_v16 = vmul.f32 %v369_v14, %v191_v15 }
 0x11f   : > { %v193_v17 = vmul.f32 0.5, %v192_v16 }
 0x121   : > { %v194_v18 = vsub.f32 1.5, %v193_v17 }
 0x123   : > { %v195_v19 = vmul.f32 %v369_v14, %v194_v18 }
 0x125   : > { %v196_v20 = vmul.f32 %v195_v19, %v187_v13 }
 0x127   : > { %v198_v22 = vsel %vm197_vm2, %v187_v13, %v196_v20 }
 0x128   : > { %v201_v23 = vsel %vm199_vm3, %v200_v21, %v198_v22 }
 0x129   : > { %v202_v24 = vadd.f32 1e-06, %v201_v23 }
 0x12b   : > { %370 = vrcp.f32 %v202_v24  ;;  %v214_v28 = vand.u32 2147483648, %v202_v24  ;;  %v212_v30 = vand.u32 2147483647, %v202_v24  ;;  %vm208_vm5 = vweird.f32 %v202_v24 }
 0x12d   : > { %v215_v32 = vor.u32 1.1754944e-38, %v214_v28  ;;  %vm213_vm7 = vcmp.eq.f32.partialorder %v212_v30, 8.507059e+37 }
 0x131   : > { %v371_v25 = vpop.eup %370 }
 0x132   : > { %v204_v26 = vmul.f32 %v371_v25, %v202_v24  ;;  %vm209_vm4 = vweird.f32 %v371_v25 }
 0x133   : > { %vm210_vm6 = vmor %vm208_vm5, %vm209_vm4 }
 0x134   : > { %v205_v27 = vsub.f32 1.0, %v204_v26 }
 0x136   : > { %v206_v29 = vmul.f32 %v371_v25, %v205_v27 }
 0x138   : > { %v207_v31 = vadd.f32 %v371_v25, %v206_v29 }
 0x13a   : > { %v211_v33 = vsel %vm210_vm6, %v371_v25, %v207_v31 }
 0x13b   : > { %v216_v34 = vsel %vm213_vm7, %v215_v32, %v211_v33 }
 0x13c   : > { %218 = vst.msk [vmem:[%s171_s25] sm:$0xff] %vm188_vm1, %v216_v34 }
 0x13d PF: > { %p13_p7 = scmp.ge.s32.totalorder %s476_s14, 4   ;;  %s566_s9 = smov %s428_s10 }
 0x13e   : > { %s567_s10 = smov %s432_s11  ;;  %s568_s11 = smov %s486_s17 }
 0x13f   : > { %s569_s12 = smov %s476_s14  ;;  %15 = sbr.rel (!%p13_p7) target bundleno = 3 (0x3), region = 76 }
 0x144   :  { %252 = vsyncpa [#allocation3], 1 }
 0x145   :  { %254 = vsyncpa [#allocation3 + $0x1], 1 }

// kernel: forward_f32.3
= control target key start
LH: loop header
LB: loop body
LE: loop exit
PB: predicated region body
PF: predicated region fallthrough
CT: control target
= control target key end

     0   :  { %13 = vsyncpa [#allocation3], 0  ;;  %s1840_s0 = inlined_call_operand.hbm [shape: f32[16,128], index: 0, kind: input, shape index: {}, may-alias: {0,7}]   ;;  %s1841_s1 = inlined_call_operand.vmem [shape: f32[16,1], index: 1, kind: input, shape index: {}]   ;;  %s1842_s2 = inlined_call_operand.vmem [shape: f32[16,1], index: 2, kind: input, shape index: {}]   ;;  %s1843_s3 = inlined_call_operand.vmem [shape: f32[1,128], index: 3, kind: input, shape index: {}]   ;;  %s1844_s4 = inlined_call_operand.vmem [shape: f32[1,128], index: 4, kind: input, shape index: {}]   ;;  %s1845_s5 = inlined_call_operand.hbm [shape: f32[128,128], index: 5, kind: input, shape index: {}]   ;;  %s1846_s6 = inlined_call_operand.vmem [shape: f32[1,128], index: 6, kind: input, shape index: {}]   ;;  %s1847_s7 = inlined_call_operand.hbm [shape: f32[16,128], index: 7, kind: input, shape index: {}, may-alias: {0,7}]   ;;  %s1848_s8 = inlined_call_operand.hbm [shape: f32[16,128], index: 8, kind: output, shape index: {}]  }
   0x1   :  { %15 = vsyncpa [#allocation3 + $0x1], 0 }
   0x2   :  { %16 = vsyncpa [#allocation6], 0 }
   0x3   :  { %17 = vsyncpa [#allocation4], 0 }
   0x4   :  { %19 = vsyncpa [#allocation4 + $0x1], 0  ;;  %s1421_s27 = smov 0   ;;  %s1423_s28 = smov 0  }
   0x5   :  { %s1425_s29 = smov 0   ;;  %s1427_s30 = smov 0  }
   0x6   :  { %s1429_s9 = smov 0   ;;  %s1431_s10 = smov 0  }
   0x7 LB: > { %1852 = sst [smem:[#allocation13_spill]] %s1358_s29  ;;  %s1452_s11 = sadd.s32 4294967295, %s1370_s10   ;;  %s1370_s10 = sphi %s1431_s10, %s25_s10   ;;  %s1366_s9 = sphi %s1429_s9, %s1865_s9   ;;  %s1362_s30 = sphi %s1427_s30, %s1864_s30   ;;  %s1358_s29 = sphi %s1425_s29, %s1863_s29   ;;  %s1354_s28 = sphi %s1423_s28, %s1867_s28   ;;  %s1350_s27 = sphi %s1421_s27, %s1866_s27  }
   0x8   : > { %1853 = sst [smem:[#allocation14_spill]] %s1366_s9  ;;  %s1083_s12 = sadd.s32 4294967294, %s1370_s10  }
   0x9   : > { %s44_s13 = sadd.s32 1, %s1366_s9  ;;  %s53_s14 = sadd.s32 1, %s1358_s29 }
   0xa   : > { %p46_p0 = scmp.ge.s32.totalorder %s44_s13, 2  ;;  %p60_p1 = scmp.ne.s32.totalorder %s1358_s29, %s1354_s28 }
   0xb   : > { %p61_p2 = scmp.eq.s32.totalorder %s1370_s10, 0  ;;  %p66_p3 = scmp.ne.s32.totalorder %s1354_s28, %s1350_s27 }
   0xc   : > { %s1869_s13 = smov (%p46_p0, %s44_s13), 0  ;;  %p278_p5 = scmp.eq.s32.totalorder %s1452_s11, 1 }
   0xd   : > { %1854 = sst [smem:[#allocation15_spill]] %s1869_s13  ;;  %p1464_p4 = por %p61_p2, %p60_p1 }
   0xe   : > { %s48_s16 = ssub.s32 %s1366_s9, %s1869_s13  ;;  %p284_p6 = scmp.eq.s32.totalorder %s1083_s12, 1 }
   0xf   : > { %p51_p7 = scmp.eq.s32.totalorder %s48_s16, 0  ;;  %p1471_p8 = por %p278_p5, %p60_p1 }
  0x10   : > { %p1478_p9 = por %p284_p6, %p66_p3  ;;  %p1089_p10 = scmp.ge.s32.totalorder %s1370_s10, 2 }
  0x11   : > { %s1483_s19 = scalar_select %p51_p7, %s1358_s29, %s53_s14  }
  0x12   : > { %p1131_p11 = scmp.lt.s32.totalorder %s1370_s10, 2  ;;  %s340_s20 = sand.u32 1, %s1370_s10  }
  0x13   : > { %1858 = sst [smem:[#allocation16_spill]] %s1483_s19  ;;  %s342_s21 = sand.u32 1, %s1358_s29  }
  0x14   : > { %s1090_s22 = sshll.u32 %s342_s21, 3  ;;  %s1091_s23 = sshll.u32 %s1366_s9, 3 }
  0x15   : > { %s349_s26 = scalar_lea.hbm %s1840_s0, %s1091_s23  ;;  %s344_s12 = scalar_lea.vmem [#allocation2], %s1090_s22 }
  0x16   : > { %s353_s16 = sshll.u32 %s344_s12, 4  ;;  %s351_s14 = sshll.u32 %s349_s26, 4  ;;  %s354_s16 = int_to_ptr.vmem [resolvable:$true] %s353_s16  ;;  %s352_s14 = int_to_ptr.hbm [resolvable:$true] %s351_s14 }
  0x17   : > { %p1495_p12 = pnand %p1131_p11, %p1464_p4  ;;  %s383_s21 = scalar_lea.hbm %s1847_s7, %s1091_s23 }
  0x18   : > { %s341_s9 = scalar_lea.sflag [#allocation3], %s340_s20  ;;  %p67_p13 = scmp.eq.s32.totalorder %s1452_s11, 0 }
  0x19   : > { %1122 = dma.hbm_to_vmem [thread:$0]  (!%p1495_p12), %s352_s14, 128, %s354_s16, %s341_s9  }
  0x1a   : > { %p1084_p0 = scmp.ge.s32.totalorder %s1370_s10, 1  ;;  %p291_p1 = scmp.lt.s32.totalorder %s1370_s10, 3 }
  0x1b   : > { %p1512_p2 = por %p67_p13, %p66_p3  ;;  %s318_s26 = sshll.u32 %s1845_s5, 4  ;;  %s319_s26 = int_to_ptr.hbm [resolvable:$true] %s318_s26 }
  0x1c   : > { %p1519_p4 = pnand %p1084_p0, %p291_p1  ;;  %s1372_s19 = smov [#allocation5]  }
  0x1d   : > { %s320_s20 = sshll.u32 %s1372_s19, 4  ;;  %s385_s23 = sshll.u32 %s383_s21, 4  ;;  %s321_s20 = int_to_ptr.vmem [resolvable:$true] %s320_s20  ;;  %s386_s23 = int_to_ptr.hbm [resolvable:$true] %s385_s23 }
  0x1e   : > { %p1115_p5 = pneg %p1519_p4  ;;  %s378_s12 = scalar_lea.vmem [#allocation7], %s1090_s22 }
  0x1f   : > { %s387_s16 = sshll.u32 %s378_s12, 4  ;;  %s1373_s14 = smov 128   ;;  %s388_s16 = int_to_ptr.vmem [resolvable:$true] %s387_s16 }
  0x20   : > { %p1116_p3 = pnand %p1115_p5, %p67_p13  ;;  %s1374_s24 = smov 8  }
  0x21   : > { %1125 = dma.hbm_to_vmem [thread:$0]  (!%p1495_p12), %s386_s23, 128, %s388_s16, %s341_s9  }
  0x22   : > { %1118 = dma.hbm_to_vmem [thread:$0]  (!%p1116_p3), %s319_s26, 2048, %s321_s20, [#allocation6], %s1373_s14, %s1373_s14, %s1374_s24  }
  0x23   : > { %396 = sbr.rel (%p1519_p4) target bundleno = 334 (0x14e), region = 52  ;;  %s398_s25 = sand.u32 (!%p1519_p4), 1, %s1452_s11  }
  0x24   : > { %s400_s19 = sand.u32 (!%p1519_p4), 1, %s1354_s28   ;;  %s399_s22 = scalar_lea.sflag (!%p1519_p4), [#allocation3], %s398_s25 }
  0x25   : > { %s1535_s21 = sshll.u32 (!%p1519_p4), %s400_s19, 3 }
  0x26   : > { %s402_s12 = scalar_lea.vmem (!%p1519_p4), [#allocation2], %s1535_s21 }
  0x28   : > { %1333 = dma.done.wait (%p1512_p2), %s399_s22, 128  }
  0x29   : > { %1335 = vsyncadd (%p1512_p2), %s399_s22, 4294967168 }
  0x2a   : > { %1337 = dma.done.wait (%p67_p13), [#allocation6], 2048  }
  0x2b   : > { %1339 = vsyncadd (%p67_p13), [#allocation6], 4294965248  ;;  %s417_s9 = scalar_lea.vmem [#allocation7], %s1535_s21 }
  0x2c   : > { %1341 = dma.done.wait (%p1512_p2), %s399_s22, 128  }
  0x2d   : > { %1343 = vsyncadd (%p1512_p2), %s399_s22, 4294967168  ;;  %p473_p6 = scmp.lt.s32.totalorder %s1362_s30, 1  ;;  %v1375_v0 = vmov 0   ;;  %v531_v2 = vld [vmem:[#allocation5 + $0x78] sm:$0xff]  ;;  %v530_v4 = vld [vmem:[#allocation5 + $0x70] sm:$0xff]  ;;  %s472_s15 = scalar_lea.vmem [#allocation8], %s1535_s21 }
  0x2e   : > { %1186 = vset.pattern.permute.xlu0 %v1375_v0  ;;  %v1556_v3 = vand.u32 4294901760, %v531_v2  ;;  %v529_v5 = vld [vmem:[#allocation5 + $0x68] sm:$0xff]  ;;  %v528_v6 = vld [vmem:[#allocation5 + $0x60] sm:$0xff]  ;;  %v1558_v7 = vand.u32 4294901760, %v530_v4  ;;  %v527_v10 = vld [vmem:[#allocation5 + $0x58] sm:$0xff]  ;;  %s1300_s21 = scalar_lea.hbm %s1848_s8, 16 }
  0x2f   : > { %s474_s13 = scalar_select %p473_p6, %s1362_s30, 1  ;;  %v1560_v8 = vand.u32 4294901760, %v529_v5  ;;  %v1562_v9 = vand.u32 4294901760, %v528_v6  ;;  %v526_v11 = vld [vmem:[#allocation5 + $0x50] sm:$0xff]  ;;  %v525_v12 = vld [vmem:[#allocation5 + $0x48] sm:$0xff]  ;;  %v1571_v14 = vand.u32 4294901760, %v527_v10 }
  0x30   : > { %v1568_v13 = vsub.f32 %v531_v2, %v1556_v3  ;;  %545 = vmatpush.msra.mxu0 %v1556_v3  ;;  %v1573_v15 = vand.u32 4294901760, %v526_v11  ;;  %v1575_v16 = vand.u32 4294901760, %v525_v12  ;;  %v524_v17 = vld [vmem:[#allocation5 + $0x40] sm:$0xff]  ;;  %741 = vmatpush.msra.mxu3 %v1556_v3  ;;  %v1579_v18 = vsub.f32 %v530_v4, %v1558_v7  ;;  %v523_v35 = vld [vmem:[#allocation5 + $0x38] sm:$0xff]  ;;  %v522_v39 = vld [vmem:[#allocation5 + $0x30] sm:$0xff] }
  0x31   : > { %s1099_s26 = sshll.u32 %s474_s13, 3  ;;  %v1582_v19 = vsub.f32 %v529_v5, %v1560_v8  ;;  %v1585_v20 = vsub.f32 %v528_v6, %v1562_v9  ;;  %v1587_v21 = vand.u32 4294901760, %v524_v17  ;;  %v1591_v23 = vsub.f32 %v527_v10, %v1571_v14  ;;  %v521_v40 = vld [vmem:[#allocation5 + $0x28] sm:$0xff]  ;;  %v520_v43 = vld [vmem:[#allocation5 + $0x20] sm:$0xff]  ;;  %v519_v50 = vld [vmem:[#allocation5 + $0x18] sm:$0xff] }
  0x32   : > { %s476_s11 = scalar_lea.vmem %s1841_s1, %s1099_s26  ;;  %s480_s16 = scalar_lea.vmem %s1842_s2, %s1099_s26  ;;  %v587_v22 = vand.u32 4294901760, %v1568_v13  ;;  %547 = vmatpush.msra.mxu0 %v1558_v7  ;;  %v1595_v24 = vsub.f32 %v526_v11, %v1573_v15  ;;  %688 = vmatpush.msra.mxu2 %v1568_v13  ;;  %v593_v26 = vand.u32 4294901760, %v1579_v18  ;;  %v1602_v29 = vsub.f32 %v525_v12, %v1575_v16  ;;  %v518_v57 = vld [vmem:[#allocation5 + $0x10] sm:$0xff]  ;;  %v517_v63 = vld [vmem:[#allocation5 + $0x8] sm:$0xff]  ;;  %v516_v6 = vld [vmem:[#allocation5] sm:$0xff] }
  0x33   : > { %v492_v1 = vld [vmem:[%s476_s11] sm:$0xff]  ;;  %v599_v27 = vand.u32 4294901760, %v1582_v19  ;;  %v605_v28 = vand.u32 4294901760, %v1585_v20  ;;  %743 = vmatpush.msra.mxu3 %v1558_v7  ;;  %v611_v31 = vand.u32 4294901760, %v1591_v23  ;;  %v1618_v34 = vsub.f32 %v524_v17, %v1587_v21 }
  0x34   : > { %495 = vperm.xlu0 %1186, %v492_v1   ;;  %v499_v25 = vld [vmem:[%s480_s16] sm:$0xff]  ;;  %v588_v30 = vsub.f32 %v1568_v13, %v587_v22  ;;  %549 = vmatpush.msra.mxu0 %v1560_v8  ;;  %v594_v32 = vsub.f32 %v1579_v18, %v593_v26  ;;  %v617_v38 = vand.u32 4294901760, %v1595_v24  ;;  %v623_v42 = vand.u32 4294901760, %v1602_v29 }
  0x35   : > { %691 = vmatpush.msra.mxu2 %v1579_v18  ;;  %v600_v33 = vsub.f32 %v1582_v19, %v599_v27  ;;  %745 = vmatpush.msra.mxu3 %v1560_v8  ;;  %v606_v37 = vsub.f32 %v1585_v20, %v605_v28  ;;  %v612_v45 = vsub.f32 %v1591_v23, %v611_v31  ;;  %v1633_v46 = vand.u32 4294901760, %v523_v35 }
  0x36   : > { %v589_v36 = vand.u32 4294901760, %v588_v30  ;;  %551 = vmatpush.msra.mxu0 %v1562_v9  ;;  %v595_v41 = vand.u32 4294901760, %v594_v32  ;;  %v629_v47 = vand.u32 4294901760, %v1618_v34  ;;  %v1636_v48 = vand.u32 4294901760, %v522_v39 }
  0x37   : > { %694 = vmatpush.msra.mxu2 %v1582_v19  ;;  %747 = vmatpush.msra.mxu3 %v1562_v9  ;;  %v601_v44 = vand.u32 4294901760, %v600_v33  ;;  %v1638_v49 = vand.u32 4294901760, %v521_v40  ;;  %v607_v51 = vand.u32 4294901760, %v606_v37  ;;  %v618_v52 = vsub.f32 %v1595_v24, %v617_v38 }
  0x38   : > { %590 = vmatpush.msra.mxu1 %v589_v36  ;;  %553 = vmatpush.msra.mxu0 %v1571_v14  ;;  %v1646_v53 = vsub.f32 %v523_v35, %v1633_v46  ;;  %v1649_v54 = vand.u32 4294901760, %v520_v43  ;;  %v624_v55 = vsub.f32 %v1602_v29, %v623_v42  ;;  %v1655_v56 = vsub.f32 %v522_v39, %v1636_v48 }
  0x39   : > { %697 = vmatpush.msra.mxu2 %v1585_v20  ;;  %749 = vmatpush.msra.mxu3 %v1571_v14  ;;  %v613_v58 = vand.u32 4294901760, %v612_v45  ;;  %v1662_v60 = vsub.f32 %v521_v40, %v1638_v49  ;;  %v1664_v61 = vand.u32 4294901760, %v519_v50  ;;  %v630_v62 = vsub.f32 %v1618_v34, %v629_v47 }
  0x3a   : > { %596 = vmatpush.msra.mxu1 %v595_v41  ;;  %555 = vmatpush.msra.mxu0 %v1573_v15  ;;  %v635_v59 = vand.u32 4294901760, %v1646_v53  ;;  %v619_v0 = vand.u32 4294901760, %v618_v52  ;;  %v641_v1 = vand.u32 4294901760, %v1655_v56  ;;  %v1674_v2 = vsub.f32 %v520_v43, %v1649_v54 }
  0x3b   : > { %700 = vmatpush.msra.mxu2 %v1591_v23  ;;  %751 = vmatpush.msra.mxu3 %v1573_v15  ;;  %v1676_v4 = vand.u32 4294901760, %v518_v57  ;;  %v625_v5 = vand.u32 4294901760, %v624_v55  ;;  %v647_v11 = vand.u32 4294901760, %v1662_v60  ;;  %v1686_v12 = vsub.f32 %v519_v50, %v1664_v61 }
  0x3c   : > { %502 = vperm.xlu0 %1186, %v499_v25   ;;  %602 = vmatpush.msra.mxu1 %v601_v44  ;;  %v636_v10 = vsub.f32 %v1646_v53, %v635_v59  ;;  %v1688_v17 = vand.u32 4294901760, %v517_v63  ;;  %v631_v25 = vand.u32 4294901760, %v630_v62  ;;  %v642_v30 = vsub.f32 %v1655_v56, %v641_v1 }
  0x3d   : > { %557 = vmatpush.msra.mxu0 %v1575_v16  ;;  %703 = vmatpush.msra.mxu2 %v1595_v24  ;;  %v653_v32 = vand.u32 4294901760, %v1674_v2  ;;  %v1698_v33 = vsub.f32 %v518_v57, %v1676_v4  ;;  %v1700_v35 = vand.u32 4294901760, %v516_v6  ;;  %v648_v37 = vsub.f32 %v1662_v60, %v647_v11 }
  0x3e   : > { %753 = vmatpush.msra.mxu3 %v1575_v16  ;;  %608 = vmatpush.msra.mxu1 %v607_v51  ;;  %v637_v36 = vand.u32 4294901760, %v636_v10  ;;  %v659_v39 = vand.u32 4294901760, %v1686_v12  ;;  %v1710_v40 = vsub.f32 %v517_v63, %v1688_v17  ;;  %v643_v41 = vand.u32 4294901760, %v642_v30 }
  0x3f   : > { %559 = vmatpush.msra.mxu0 %v1587_v21  ;;  %706 = vmatpush.msra.mxu2 %v1602_v29  ;;  %v654_v43 = vsub.f32 %v1674_v2, %v653_v32  ;;  %v665_v44 = vand.u32 4294901760, %v1698_v33  ;;  %v1720_v45 = vsub.f32 %v516_v6, %v1700_v35  ;;  %v649_v50 = vand.u32 4294901760, %v648_v37 }
  0x40   : > { %755 = vmatpush.msra.mxu3 %v1587_v21  ;;  %614 = vmatpush.msra.mxu1 %v613_v58  ;;  %v660_v51 = vsub.f32 %v1686_v12, %v659_v39  ;;  %v671_v52 = vand.u32 4294901760, %v1710_v40 }
  0x41   : > { %561 = vmatpush.msra.mxu0 %v1633_v46  ;;  %709 = vmatpush.msra.mxu2 %v1618_v34  ;;  %v655_v55 = vand.u32 4294901760, %v654_v43  ;;  %v666_v57 = vsub.f32 %v1698_v33, %v665_v44  ;;  %v677_v58 = vand.u32 4294901760, %v1720_v45 }
  0x42   : > { %757 = vmatpush.msra.mxu3 %v1633_v46  ;;  %620 = vmatpush.msra.mxu1 %v619_v0  ;;  %v661_v62 = vand.u32 4294901760, %v660_v51  ;;  %v672_v63 = vsub.f32 %v1710_v40, %v671_v52 }
  0x43   : > { %563 = vmatpush.msra.mxu0 %v1636_v48  ;;  %712 = vmatpush.msra.mxu2 %v1646_v53  ;;  %v667_v0 = vand.u32 4294901760, %v666_v57 }
  0x44   : > { %759 = vmatpush.msra.mxu3 %v1636_v48  ;;  %626 = vmatpush.msra.mxu1 %v625_v5  ;;  %v678_v5 = vsub.f32 %v1720_v45, %v677_v58  ;;  %v673_v6 = vand.u32 4294901760, %v672_v63 }
  0x45   : > { %565 = vmatpush.msra.mxu0 %v1638_v49  ;;  %715 = vmatpush.msra.mxu2 %v1655_v56 }
  0x46   : > { %761 = vmatpush.msra.mxu3 %v1638_v49  ;;  %632 = vmatpush.msra.mxu1 %v631_v25  ;;  %v679_v10 = vand.u32 4294901760, %v678_v5 }
  0x47   : > { %567 = vmatpush.msra.mxu0 %v1649_v54  ;;  %718 = vmatpush.msra.mxu2 %v1662_v60 }
  0x48   : > { %763 = vmatpush.msra.mxu3 %v1649_v54  ;;  %638 = vmatpush.msra.mxu1 %v637_v36 }
  0x49   : > { %569 = vmatpush.msra.mxu0 %v1664_v61  ;;  %721 = vmatpush.msra.mxu2 %v1674_v2 }
  0x4a   : > { %765 = vmatpush.msra.mxu3 %v1664_v61  ;;  %644 = vmatpush.msra.mxu1 %v643_v41 }
  0x4b   : > { %571 = vmatpush.msra.mxu0 %v1676_v4  ;;  %724 = vmatpush.msra.mxu2 %v1686_v12 }
  0x4c   : > { %767 = vmatpush.msra.mxu3 %v1676_v4  ;;  %650 = vmatpush.msra.mxu1 %v649_v50 }
  0x4d   : > { %573 = vmatpush.msra.mxu0 %v1688_v17  ;;  %727 = vmatpush.msra.mxu2 %v1698_v33 }
  0x4e   : > { %769 = vmatpush.msra.mxu3 %v1688_v17  ;;  %656 = vmatpush.msra.mxu1 %v655_v55 }
  0x4f   : > { %575 = vmatpush.msra.mxu0 %v1700_v35  ;;  %730 = vmatpush.msra.mxu2 %v1710_v40 }
  0x50   : > { %662 = vmatpush.msra.mxu1 %v661_v62  ;;  %771 = vmatpush.msra.mxu3 %v1700_v35 }
  0x51   : > { %782 = vmatpush.msrb.mxu0 %v587_v22  ;;  %733 = vmatpush.msra.mxu2 %v1720_v45 }
  0x52   : > { %668 = vmatpush.msra.mxu1 %v667_v0 }
  0x53   : > { %786 = vmatpush.msrb.mxu0 %v593_v26 }
  0x54   : > { %674 = vmatpush.msra.mxu1 %v673_v6 }
  0x55   : > { %790 = vmatpush.msrb.mxu0 %v599_v27 }
  0x56   : > { %680 = vmatpush.msra.mxu1 %v679_v10 }
  0x57   : > { %794 = vmatpush.msrb.mxu0 %v605_v28 }
  0x58   : > { %849 = vmatpush.msrb.mxu1 %v1556_v3 }
  0x59   : > { %798 = vmatpush.msrb.mxu0 %v611_v31  ;;  %v1189_v31 = vld [vmem:[%s1846_s6] ss:$0 sm:$0xff] }
  0x5a   : > { %851 = vmatpush.msrb.mxu1 %v1558_v7  ;;  %v491_v7 = vld [vmem:[%s402_s12] sm:$0xff]  ;;  %s1102_s12 = sshll.u32 %s1362_s30, 3  ;;  %s901_s30 = sshll.u32 %s472_s15, 4  ;;  %s902_s30 = int_to_ptr.vmem [resolvable:$true] %s901_s30 }
  0x5b   : > { %802 = vmatpush.msrb.mxu0 %v617_v38  ;;  %v537_v38 = vld [vmem:[%s417_s9] sm:$0xff]  ;;  %s899_s11 = scalar_lea.hbm %s1848_s8, %s1102_s12  ;;  %s888_s9 = scalar_lea.sflag [#allocation4], %s400_s19 }
  0x5c   : > { %853 = vmatpush.msrb.mxu1 %v1560_v8  ;;  %s903_s23 = sshll.u32 %s899_s11, 4  ;;  %s904_s23 = int_to_ptr.hbm [resolvable:$true] %s903_s23 }
  0x5d   : > { %806 = vmatpush.msrb.mxu0 %v623_v42  ;;  %s1294_s16 = sshra.s32 %s904_s23, 4  ;;  %s1295_s16 = int_to_ptr.hbm [resolvable:$true] %s1294_s16 }
  0x5e   : > { %855 = vmatpush.msrb.mxu1 %v1562_v9  ;;  %v1187_v9 = vld [vmem:[%s1843_s3] ss:$0 sm:$0xff]  ;;  %s1296_s14 = scalar_lea.hbm %s1295_s16, 8  ;;  %p1301_p13 = scmp.lt.s32.totalorder %s1295_s16, %s1848_s8 }
  0x5f   : > { %810 = vmatpush.msrb.mxu0 %v629_v47  ;;  %v541_v47 = vadd.f32 %v1189_v31, %v537_v38  ;;  %p1297_p7 = scmp.ne.s32.totalorder %s1295_s16, %s1296_s14  ;;  %p1302_p0 = scmp.lt.s32.totalorder %s1300_s21, %s1296_s14 }
  0x60   : > { %857 = vmatpush.msrb.mxu1 %v1571_v14  ;;  %v1188_v14 = vld [vmem:[%s1844_s4] ss:$0 sm:$0xff] }
  0x61   : > { %814 = vmatpush.msrb.mxu0 %v635_v59  ;;  %p1298_p11 = pnand %p1297_p7, %p1471_p8  ;;  %p1303_p1 = por %p1302_p0, %p1301_p13 }
  0x62   : > { %859 = vmatpush.msrb.mxu1 %v1573_v15 }
  0x63   : > { %818 = vmatpush.msrb.mxu0 %v641_v1  ;;  %p1299_p12 = pneg %p1298_p11 }
  0x64   : > { %861 = vmatpush.msrb.mxu1 %v1575_v16 }
  0x65   : > { %822 = vmatpush.msrb.mxu0 %v647_v11  ;;  %p1304_p2 = pnand %p1303_p1, %p1299_p12 }
  0x66   : > { %863 = vmatpush.msrb.mxu1 %v1587_v21 }
  0x67   : > { %826 = vmatpush.msrb.mxu0 %v653_v32 }
  0x68   : > { %865 = vmatpush.msrb.mxu1 %v1633_v46 }
  0x69   : > { %830 = vmatpush.msrb.mxu0 %v659_v39 }
  0x6a   : > { %867 = vmatpush.msrb.mxu1 %v1636_v48 }
  0x6b   : > { %834 = vmatpush.msrb.mxu0 %v665_v44 }
  0x6c   : > { %869 = vmatpush.msrb.mxu1 %v1638_v49 }
  0x6d   : > { %838 = vmatpush.msrb.mxu0 %v671_v52 }
  0x6e   : > { %871 = vmatpush.msrb.mxu1 %v1649_v54 }
  0x6f   : > { %842 = vmatpush.msrb.mxu0 %v677_v58 }
  0x70   : > { %873 = vmatpush.msrb.mxu1 %v1664_v61 }
  0x72   : > { %875 = vmatpush.msrb.mxu1 %v1676_v4 }
  0x74   : > { %877 = vmatpush.msrb.mxu1 %v1688_v17 }
  0x76   : > { %879 = vmatpush.msrb.mxu1 %v1700_v35 }
  0xa6   : > { %v496_v3 = vpop.permute.xlu0 %495 }
  0xa7   : > { %v498_v8 = vsub.f32 %v491_v7, %v496_v3 }
  0xae   : > { %v503_v13 = vpop.permute.xlu0 %502 }
  0xaf   : > { %v505_v15 = vmul.f32 %v503_v13, %v498_v8 }
  0xb1   : > { %v510_v16 = vmul.f32 %v1187_v9, %v505_v15 }
  0xb3   : > { %v515_v18 = vadd.f32 %v1188_v14, %v510_v16 }
  0xb5   : > { %v576_v19 = vand.u32 4294901760, %v515_v18 }
  0xb7   : > { %682 = vmatmul.f32.vlgmr.msra.gmra.mxu1 %v576_v19  ;;  %v577_v20 = vsub.f32 %v515_v18, %v576_v19 }
  0xb9   : > { %736 = vmatmul.f32.vlgmr.msra.gmra.mxu2 %v577_v20  ;;  %v578_v21 = vand.u32 4294901760, %v577_v20 }
  0xbb   : > { %775 = vmatmul.f32.vlgmr.msra.gmra.mxu3 %v578_v21  ;;  %v579_v22 = vsub.f32 %v577_v20, %v578_v21 }
  0xbd   : > { %v580_v23 = vand.u32 4294901760, %v579_v22 }
  0xbf   : > { %581 = vmatmul.f32.vlgmr.msra.gmra.mxu0 %v580_v23  ;;  %881 = vmatmul.f32.vlgmr.msrb.gmra.mxu1 %v576_v19 }
  0xc7   : > { %844 = vmatmul.f32.vlgmr.msrb.gmra.mxu0 %v576_v19 }
 0x134   : > { %v683_v24 = vpop.f32.mrf.mxu1 }
 0x13c   : > { %v582_v26 = vpop.f32.mrf.mxu0  ;;  %v737_v28 = vpop.f32.mrf.mxu2 }
 0x13d   : > { %v684_v27 = vadd.f32 %v683_v24, %v582_v26  ;;  %v882_v49 = vpop.f32.mrf.mxu1 }
 0x13e   : > { %v776_v34 = vpop.f32.mrf.mxu3 }
 0x13f   : > { %v738_v29 = vadd.f32 %v737_v28, %v684_v27 }
 0x141   : > { %v777_v42 = vadd.f32 %v776_v34, %v738_v29 }
 0x144   : > { %v845_v46 = vpop.f32.mrf.mxu0 }
 0x145   : > { %v846_v48 = vadd.f32 %v845_v46, %v777_v42 }
 0x147   : > { %v883_v53 = vadd.f32 %v882_v49, %v846_v48 }
 0x149   : > { %v885_v54 = vadd.f32 %v883_v53, %v541_v47 }
 0x14b   : > { %886 = vst [vmem:[%s472_s15] sm:$0xff] %v885_v54 }
 0x14c   : > { %1307 = shalt.err (!%p1304_p2)
}
 0x14d   : > { %1113 = dma.vmem_to_hbm [thread:$0]  (%p1471_p8), %s902_s30, 128, %s904_s23, %s888_s9  }
 0x14e PF: > { %s915_s19 = sand.u32 1, %s1350_s27   ;;  %p1127_p4 = pnand %p1089_p10, %p1478_p9 }
 0x14f   : > { %s916_s13 = scalar_lea.sflag [#allocation4], %s915_s19 }
 0x150   : > { %p1128_p5 = pneg %p1127_p4 }
 0x152   : > { %1345 = dma.done.wait (%p1128_p5), %s916_s13, 128  }
 0x153   : > { %1347 = vsyncadd (%p1128_p5), %s916_s13, 4294967168  ;;  %s25_s10 = sadd.s32 1, %s1370_s10   ;;  %s1862_s26 = sld [smem:[#allocation13_spill]] }
 0x154   : > { %p22_p3 = scmp.ge.s32.totalorder %s25_s10, 4   ;;  %s1863_s29 = sld [smem:[#allocation16_spill]] }
 0x155   : > { %s1864_s30 = sld [smem:[#allocation14_spill]]  ;;  %s1866_s27 = smov %s1354_s28 }
 0x156   : > { %s1865_s9 = sld [smem:[#allocation15_spill]]  ;;  %24 = sbr.rel (!%p22_p3) target bundleno = 7 (0x7), region = 132 }
 0x159   : > { %s1867_s28 = smov %s1862_s26 }
 0x15b   :  { %922 = vsyncpa [#allocation3], 1 }
 0x15c   :  { %924 = vsyncpa [#allocation3 + $0x1], 1 }
 0x15d   :  { %925 = vsyncpa [#allocation6], 1 }
 0x15e   :  { %926 = vsyncpa [#allocation4], 1 }
 0x15f   :  { %928 = vsyncpa [#allocation4 + $0x1], 1 }

</bundles_post_ra>
